<compile_context>
chip_gen: v5e
topology: v5e:2x2
jax: 0.10.0
libtpu: 0.0.40
codegen_flags: <defaults>
</compile_context>

<pallas_src>
from functools import partial

import jax
import jax.numpy as jnp
from jax.experimental import pallas as pl
from jax.experimental.pallas import tpu as pltpu


def _round_up(x: int, m: int) -> int:
    return (x + m - 1) // m * m


def _vmem_capacity_bytes() -> int:
    """Physical per-core VMEM, with a conservative fallback."""
    try:
        cap = getattr(pltpu.get_tpu_info(), "vmem_capacity_bytes", None)
        if cap:
            return int(cap)
    except Exception:
        pass
    return 64 << 20  # v7x per-TensorCore VMEM (smallest current generation)


# --------------------------------------------------------------------------
# Path 1: VMEM-resident table, one-hot x table matmul (tiny vocabularies).
# --------------------------------------------------------------------------
def _resident_kernel(ids_ref, w_ref, out_ref, *, scale, high_precision):
    # ids_ref: (G, 1) int32 token ids for this block (VMEM)
    # w_ref:   (V, Dp) embedding table, resident across the whole grid (VMEM)
    # out_ref: (G, Dp) output tile
    #
    # Out-of-range ids produce an all-zero one-hot row -> all-zero output row;
    # no out-of-bounds access by construction (PyTorch would raise instead).
    #
    # TODO(synk): benchmark an in-kernel jnp.take(w_ref[...], ids[:, 0], axis=0)
    # (O(G*D) sublane gather) against this O(G*V*D) one-hot matmul once its
    # Mosaic lowering is verified via pl.lower_as_mlir.
    ids = ids_ref[...]                                     # (G, 1)
    g = ids.shape[0]
    v = w_ref.shape[0]
    vocab_iota = jax.lax.broadcasted_iota(jnp.int32, (g, v), 1)
    onehot = (ids == vocab_iota).astype(w_ref.dtype)       # (G, V): exact 0/1
    precision = jax.lax.Precision.HIGHEST if high_precision else None
    emb = jnp.dot(onehot, w_ref[...],
                  preferred_element_type=jnp.float32, precision=precision)
    out_ref[...] = (emb * scale).astype(out_ref.dtype)


def _resident_forward(ids2d, w_pad, *, g, scale, vmem_limit,
                      single_buffer_table, high_precision):
    n_padded = ids2d.shape[0]
    V, Dp = w_pad.shape
    n_blocks = n_padded // g

    table_kwargs = {}
    if single_buffer_table:
        # Constant index_map -> the table is streamed in exactly once; don't
        # pay VMEM for a second buffer of it.
        table_kwargs["pipeline_mode"] = pl.Buffered(1)

    # TODO(synk): for decode-sized calls on v7x (n_tokens*D << V*D) consider
    # "arbitrary" here so the resident table is not streamed into both
    # TensorCores' VMEMs; output blocks are independent, so "parallel" is kept.
    cp_kwargs = dict(dimension_semantics=("parallel",))
    if vmem_limit is not None:
        cp_kwargs["vmem_limit_bytes"] = int(vmem_limit)

    return pl.pallas_call(
        partial(_resident_kernel, scale=float(scale),
                high_precision=high_precision),
        out_shape=jax.ShapeDtypeStruct((n_padded, Dp), w_pad.dtype),
        grid=(n_blocks,),
        in_specs=[
            pl.BlockSpec((g, 1), lambda i: (i, 0)),                  # per-block ids
            pl.BlockSpec((V, Dp), lambda i: (0, 0), **table_kwargs),  # resident table
        ],
        out_specs=pl.BlockSpec((g, Dp), lambda i: (i, 0)),
        compiler_params=pltpu.CompilerParams(**cp_kwargs),
    )(ids2d, w_pad)


# --------------------------------------------------------------------------
# Path 2: HBM table, double-buffered per-row DMA gather (large vocabularies).
# --------------------------------------------------------------------------
def _gather_kernel(ids_ref, w_hbm_ref, out_ref, buf_ref, sem_ref, *,
                   scale, g, vocab, n_ids):
    # ids_ref:   (n_ids,) int32 token ids, scalar-prefetched into SMEM
    # w_hbm_ref: (V, D) embedding table left in HBM (memory_space=pl.ANY)
    # out_ref:   (G, D) output tile (VMEM, auto-pipelined)
    # buf_ref:   (2, G, D) VMEM scratch: double-buffered gathered rows
    # sem_ref:   (2,) DMA semaphores, one per buffer slot
    i = pl.program_id(0)
    nb = pl.num_programs(0)
    slot = i % 2

    def start_block(block_idx, s):
        base = block_idx * g

        def body(r, carry):
            # Clamp the flat index so the traced-but-skipped prefetch at the
            # last grid step never builds an OOB address, and clamp the token
            # id so bad ids cannot trigger an OOB DMA (PyTorch would raise).
            idx = jnp.minimum(base + r, n_ids - 1)
            tok = ids_ref[idx]
            tok = jnp.minimum(jnp.maximum(tok, 0), vocab - 1)
            pltpu.make_async_copy(
                w_hbm_ref.at[tok], buf_ref.at[s, r], sem_ref.at[s]).start()
            return carry

        jax.lax.fori_loop(0, g, body, 0)

    def wait_block(s):
        def body(r, carry):
            # Dummy src row: only the (D,) transfer size and the semaphore
            # matter for the wait; one wait per issued row copy.
            pltpu.make_async_copy(
                w_hbm_ref.at[0], buf_ref.at[s, r], sem_ref.at[s]).wait()
            return carry

        jax.lax.fori_loop(0, g, body, 0)

    @pl.when(i == 0)
    def _():
        start_block(0, 0)                 # prime the pipeline

    @pl.when(i + 1 < nb)
    def _():
        start_block(i + 1, 1 - slot)      # prefetch next block into other slot

    wait_block(slot)
    rows = buf_ref[slot]                  # (G, D)
    out_ref[...] = (rows.astype(jnp.float32) * float(scale)).astype(out_ref.dtype)


def _gather_forward(ids_flat, weight, *, g, scale):
    n_padded = ids_flat.shape[0]
    V, D = weight.shape
    n_blocks = n_padded // g

    grid_spec = pltpu.PrefetchScalarGridSpec(
        num_scalar_prefetch=1,
        grid=(n_blocks,),
        in_specs=[pl.BlockSpec(memory_space=pl.ANY)],       # table stays in HBM
        out_specs=pl.BlockSpec((g, D), lambda i, ids: (i, 0)),
        scratch_shapes=[
            pltpu.VMEM((2, g, D), weight.dtype),             # double-buffered rows
            pltpu.SemaphoreType.DMA((2,)),                   # one DMA sem per slot
        ],
    )
    return pl.pallas_call(
        partial(_gather_kernel, scale=float(scale), g=g, vocab=int(V),
                n_ids=int(n_padded)),
        out_shape=jax.ShapeDtypeStruct((n_padded, D), weight.dtype),
        grid_spec=grid_spec,
        # Double-buffer state is carried across grid steps -> sequential axis.
        compiler_params=pltpu.CompilerParams(dimension_semantics=("arbitrary",)),
    )(ids_flat, weight)


# --------------------------------------------------------------------------
# Public wrapper (forward pass of ScaledEmbedding).
# --------------------------------------------------------------------------
def scaled_embedding(x, weight, scale, *, block_tokens=None, use_gather=None,
                     resident_vocab_limit=1024):
    """Pallas equivalent of ScaledEmbedding.forward.

    x:       integer indices, any shape (e.g. (B, T)).
    weight:  (V, D) embedding table (already divided by `scale`, mirroring
             `self.embedding.weight.data /= scale` in __init__).
    returns: weight.dtype array of shape x.shape + (D,)  == embedding(x)*scale.

    block_tokens: tokens per grid step (sweepable: 256/512/1024; defaults 256
                  for the resident path, 128 for the gather path).
    use_gather:   None = auto dispatch on vocab size & VMEM budget;
                  True/False forces a path.
    """
    V, D = weight.shape
    orig_shape = x.shape
    ids = x.reshape(-1).astype(jnp.int32)
    n_tokens = int(ids.shape[0])
    itemsize = jnp.dtype(weight.dtype).itemsize

    usable_vmem = _vmem_capacity_bytes() - (8 << 20)   # leave compiler headroom

    # ---- resident-path sizing (lane-dense padded D) ----
    Dp = _round_up(D, 128)
    Vp = _round_up(V, 128)
    g_res = 256 if block_tokens is None else int(block_tokens)
    g_res = _round_up(min(g_res, _round_up(max(n_tokens, 1), 8)), 8)
    fixed = (
        2 * g_res * 128 * 4              # (g,1) ids block, lane-padded, 2 buffers
        + 2 * g_res * Dp * itemsize      # output block, double-buffered
        + g_res * Dp * 4                 # f32 matmul accumulator
        + g_res * Vp * (4 + itemsize + 1)  # iota(i32) + one-hot(w dtype) + cmp mask
        + (1 << 20)                      # compiler scratch slack
    )
    est_1buf = V * Dp * itemsize + fixed       # table single-buffered (Buffered(1))
    est_2buf = 2 * V * Dp * itemsize + fixed   # fallback: double-buffered table

    if use_gather is None:
        # Beyond a few hundred / ~1K rows the one-hot matmul leaves the HBM
        # roofline even when it still fits VMEM, so the HBM row-gather path is
        # the primary path for non-tiny vocabularies.
        use_gather = (V > resident_vocab_limit) or (est_1buf > usable_vmem)

    if not use_gather:
        g = g_res
        n_padded = _round_up(max(n_tokens, 1), g)
        ids_p = jnp.pad(ids, (0, n_padded - n_tokens)) if n_padded != n_tokens else ids
        ids2d = ids_p.reshape(n_padded, 1)
        w_pad = weight if Dp == D else jnp.pad(weight, ((0, 0), (0, Dp - D)))

        def _limit(est):
            # Raise the scoped limit whenever the estimate exceeds the smallest
            # generation default (16 MiB on v5e), clamped to physical VMEM.
            return int(min(usable_vmem, est + (2 << 20))) if est > (16 << 20) else None

        high_precision = jnp.dtype(weight.dtype) == jnp.float32
        try:
            out_padded = _resident_forward(
                ids2d, w_pad, g=g, scale=scale, vmem_limit=_limit(est_1buf),
                single_buffer_table=True, high_precision=high_precision)
        except Exception:
            # Conservative fallback == the previously validated configuration
            # (double-buffered table, default dot precision).
            out_padded = _resident_forward(
                ids2d, w_pad, g=g, scale=scale, vmem_limit=_limit(est_2buf),
                single_buffer_table=False, high_precision=False)
        out = out_padded[:n_tokens, :D]
    else:
        g = 128 if block_tokens is None else int(block_tokens)
        g = _round_up(min(g, _round_up(max(n_tokens, 1), 8)), 8)
        n_padded = _round_up(max(n_tokens, 1), g)
        ids_p = jnp.pad(ids, (0, n_padded - n_tokens)) if n_padded != n_tokens else ids
        out_padded = _gather_forward(ids_p, weight, g=g, scale=scale)
        out = out_padded[:n_tokens]

    return out.reshape(*orig_shape, D)


def reference(x, weight, scale):
    return jnp.take(weight, x, axis=0) * scale


if __name__ == "__main__":
    key = jax.random.PRNGKey(0)
    k_w, k_x1, k_x2 = jax.random.split(key, 3)

    num_embeddings = 64
    embedding_dim = 32
    scale = 10.0

    # Deterministic parameter init mirroring nn.Embedding (N(0,1)) followed by
    # the in-__init__ division by `scale`.
    weight = jax.random.normal(
        k_w, (num_embeddings, embedding_dim), dtype=jnp.float32) / scale

    # Case 1: tiny vocab -> VMEM-resident one-hot path (auto dispatch).
    x1 = jax.random.randint(k_x1, (2, 8), 0, num_embeddings, dtype=jnp.int32)
    out1 = jax.block_until_ready(scaled_embedding(x1, weight, scale))
    ref1 = reference(x1, weight, scale)
    assert out1.shape == (2, 8, embedding_dim), out1.shape
    assert jnp.allclose(out1, ref1, atol=1e-5, rtol=1e-5), "resident path mismatch"

    # Case 2: force the HBM row-gather path with a small block size so several
    # grid steps exercise the double-buffered per-row DMA pipeline, and a
    # non-multiple token count exercises padding/slicing.
    x2 = jax.random.randint(k_x2, (2, 13), 0, num_embeddings, dtype=jnp.int32)
    out2 = jax.block_until_ready(
        scaled_embedding(x2, weight, scale, use_gather=True, block_tokens=8))
    ref2 = reference(x2, weight, scale)
    assert out2.shape == (2, 13, embedding_dim), out2.shape
    assert jnp.allclose(out2, ref2, atol=1e-5, rtol=1e-5), "gather path mismatch"

    print("KERNEL_OK")
</pallas_src>

<mosaic_0001>
module attributes {stable_mosaic.version = 11 : i64} {
  func.func @_resident_kernel(%arg0: i32, %arg1: memref<16x1xi32, #tpu.memory_space<vmem>>, %arg2: memref<64x128xf32, #tpu.memory_space<vmem>>, %arg3: memref<16x128xf32, #tpu.memory_space<vmem>>) attributes {dimension_semantics = [#tpu.dimension_semantics<parallel>], iteration_bounds = array<i64: 1>, scalar_prefetch = 0 : i64, scratch_operands = 0 : i64, tpu.core_type = #tpu.core_type<tc>, window_params = [{transform_indices = @transform_0, window_bounds = array<i64: 16, 1>}, {pipeline_mode = #tpu.pipeline_mode<synchronous>, transform_indices = @transform_1, window_bounds = array<i64: 64, 128>}, {transform_indices = @transform_2, window_bounds = array<i64: 16, 128>}]} {
    %c0 = arith.constant 0 : index
    %c0_0 = arith.constant 0 : index
    %0 = vector.load %arg1[%c0, %c0_0] : memref<16x1xi32, #tpu.memory_space<vmem>>, vector<16x1xi32>
    %1 = tpu.iota {dimensions = array<i32: 1>} : vector<16x64xi32>
    %2 = vector.broadcast %0 : vector<16x1xi32> to vector<16x64xi32>
    %3 = arith.cmpi eq, %2, %1 : vector<16x64xi32>
    %4 = arith.extui %3 : vector<16x64xi1> to vector<16x64xi32>
    %5 = arith.sitofp %4 : vector<16x64xi32> to vector<16x64xf32>
    %c0_1 = arith.constant 0 : index
    %c0_2 = arith.constant 0 : index
    %6 = vector.load %arg2[%c0_1, %c0_2] : memref<64x128xf32, #tpu.memory_space<vmem>>, vector<64x128xf32>
    %cst = arith.constant dense<0.000000e+00> : vector<16x128xf32>
    %7 = tpu.matmul %5, %6, %cst {dimension_numbers = #tpu.dot_dimension_numbers<[1], [0], [0], [1], [0, 0, 1, 1], [], []>, precision = #tpu.contract_precision<fp32>} : vector<16x64xf32>, vector<64x128xf32>, vector<16x128xf32> -> vector<16x128xf32>
    %cst_3 = arith.constant 1.000000e+01 : f32
    %8 = vector.broadcast %cst_3 : f32 to vector<16x128xf32>
    %9 = arith.mulf %7, %8 : vector<16x128xf32>
    %c0_4 = arith.constant 0 : index
    %c0_5 = arith.constant 0 : index
    %10 = vector.load %arg3[%c0_4, %c0_5] : memref<16x128xf32, #tpu.memory_space<vmem>>, vector<16x128xf32>
    tpu.vector_store %arg3[%c0_4, %c0_5], %9 {strides = array<i32>} : memref<16x128xf32, #tpu.memory_space<vmem>>, vector<16x128xf32>,
    return
  }
  func.func @transform_0(%arg0: i32) -> (i32, i32) {
    %c0_i32 = arith.constant 0 : i32
    %c0_i32_0 = arith.constant 0 : i32
    return %arg0, %c0_i32 : i32, i32
  }
  func.func @transform_1(%arg0: i32) -> (i32, i32) {
    %c0_i32 = arith.constant 0 : i32
    %c0_i32_0 = arith.constant 0 : i32
    %c0_i32_1 = arith.constant 0 : i32
    return %c0_i32, %c0_i32_0 : i32, i32
  }
  func.func @transform_2(%arg0: i32) -> (i32, i32) {
    %c0_i32 = arith.constant 0 : i32
    %c0_i32_0 = arith.constant 0 : i32
    return %arg0, %c0_i32 : i32, i32
  }
}

module attributes {stable_mosaic.version = 11 : i64} {
  func.func @_resident_kernel(%arg0: i32, %arg1: memref<16x1xi32, #tpu.memory_space<vmem>>, %arg2: memref<64x128xf32, #tpu.memory_space<vmem>>, %arg3: memref<16x128xf32, #tpu.memory_space<vmem>>) attributes {dimension_semantics = [#tpu.dimension_semantics<parallel>], iteration_bounds = array<i64: 1>, scalar_prefetch = 0 : i64, scratch_operands = 0 : i64, tpu.core_type = #tpu.core_type<tc>, window_params = [{transform_indices = @transform_0, window_bounds = array<i64: 16, 1>}, {pipeline_mode = #tpu.pipeline_mode<synchronous>, transform_indices = @transform_1, window_bounds = array<i64: 64, 128>}, {transform_indices = @transform_2, window_bounds = array<i64: 16, 128>}]} {
    %c0 = arith.constant 0 : index
    %c0_0 = arith.constant 0 : index
    %0 = vector.load %arg1[%c0, %c0_0] : memref<16x1xi32, #tpu.memory_space<vmem>>, vector<16x1xi32>
    %1 = tpu.iota {dimensions = array<i32: 1>} : vector<16x64xi32>
    %2 = vector.broadcast %0 : vector<16x1xi32> to vector<16x64xi32>
    %3 = arith.cmpi eq, %2, %1 : vector<16x64xi32>
    %4 = arith.extui %3 : vector<16x64xi1> to vector<16x64xi32>
    %5 = arith.sitofp %4 : vector<16x64xi32> to vector<16x64xf32>
    %c0_1 = arith.constant 0 : index
    %c0_2 = arith.constant 0 : index
    %6 = vector.load %arg2[%c0_1, %c0_2] : memref<64x128xf32, #tpu.memory_space<vmem>>, vector<64x128xf32>
    %cst = arith.constant dense<0.000000e+00> : vector<16x128xf32>
    %7 = tpu.matmul %5, %6, %cst {dimension_numbers = #tpu.dot_dimension_numbers<[1], [0], [0], [1], [0, 0, 1, 1], [], []>} : vector<16x64xf32>, vector<64x128xf32>, vector<16x128xf32> -> vector<16x128xf32>
    %cst_3 = arith.constant 1.000000e+01 : f32
    %8 = vector.broadcast %cst_3 : f32 to vector<16x128xf32>
    %9 = arith.mulf %7, %8 : vector<16x128xf32>
    %c0_4 = arith.constant 0 : index
    %c0_5 = arith.constant 0 : index
    %10 = vector.load %arg3[%c0_4, %c0_5] : memref<16x128xf32, #tpu.memory_space<vmem>>, vector<16x128xf32>
    tpu.vector_store %arg3[%c0_4, %c0_5], %9 {strides = array<i32>} : memref<16x128xf32, #tpu.memory_space<vmem>>, vector<16x128xf32>,
    return
  }
  func.func @transform_0(%arg0: i32) -> (i32, i32) {
    %c0_i32 = arith.constant 0 : i32
    %c0_i32_0 = arith.constant 0 : i32
    return %arg0, %c0_i32 : i32, i32
  }
  func.func @transform_1(%arg0: i32) -> (i32, i32) {
    %c0_i32 = arith.constant 0 : i32
    %c0_i32_0 = arith.constant 0 : i32
    %c0_i32_1 = arith.constant 0 : i32
    return %c0_i32, %c0_i32_0 : i32, i32
  }
  func.func @transform_2(%arg0: i32) -> (i32, i32) {
    %c0_i32 = arith.constant 0 : i32
    %c0_i32_0 = arith.constant 0 : i32
    return %arg0, %c0_i32 : i32, i32
  }
}

</mosaic_0001>

<bundles_post_ra>
// kernel: tpu_custom_call.1
= control target key start
LH: loop header
LB: loop body
LE: loop exit
PB: predicated region body
PF: predicated region fallthrough
CT: control target
= control target key end

     0   :  { %7 = vsyncpa [#allocation3], 0  ;;  %s539_s0 = inlined_call_operand.vmem [shape: s32[16,1], index: 0, kind: input, shape index: {}]   ;;  %s540_s1 = inlined_call_operand.hbm [shape: f32[64,128], index: 1, kind: input, shape index: {}]   ;;  %s541_s2 = inlined_call_operand.hbm [shape: f32[16,128], index: 2, kind: output, shape index: {}]  }
   0x1   :  { %8 = vsyncpa [#allocation4], 0  ;;  %s15_s11 = sshll.u32 %s540_s1, 4  ;;  %s433_s12 = smov [#allocation2]   ;;  %s16_s11 = int_to_ptr.hbm [resolvable:$true] %s15_s11 }
   0x2   :  { %s17_s13 = sshll.u32 %s433_s12, 4  ;;  %s434_s14 = smov 128   ;;  %s18_s13 = int_to_ptr.vmem [resolvable:$true] %s17_s13 }
   0x3   :  { %s435_s15 = smov 8  }
   0x4   :  { %23 = dma.hbm_to_vmem [thread:$0]  %s16_s11, 1024, %s18_s13, [#allocation3], %s434_s14, %s434_s14, %s435_s15  }
   0x5   :  { %429 = dma.done.wait [#allocation3], 1024  }
   0x6   :  { %430 = vsyncadd [#allocation3], 4294966272  ;;  %v436_v0 = vmov 0   ;;  %v28_v1 = vld [vmem:[%s539_s0] sm:$0xff]  ;;  %v51_v2 = vld [vmem:[#allocation2 + $0x38] sm:$0xff]  ;;  %v30_v51 = vlaneseq  ;;  %vm52_vm0 = vcmask 523264  }
   0x7   :  { %380 = vset.pattern.permute.xlu0 %v436_v0  ;;  %v463_v3 = vand.u32 4294901760, %v51_v2  ;;  %v50_v4 = vld [vmem:[#allocation2 + $0x30] sm:$0xff]  ;;  %v49_v5 = vld [vmem:[#allocation2 + $0x28] sm:$0xff]  ;;  %v48_v6 = vld [vmem:[#allocation2 + $0x20] sm:$0xff]  ;;  %v437_v54 = vmov 0.0   ;;  %s337_s22 = sshll.u32 %s541_s2, 4  ;;  %s338_s22 = int_to_ptr.hbm [resolvable:$true] %s337_s22 }
   0x8   :  { %33 = vperm.xlu0 %380, %v28_v1   ;;  %v465_v7 = vand.u32 4294901760, %v50_v4  ;;  %v467_v8 = vand.u32 4294901760, %v49_v5  ;;  %v469_v9 = vand.u32 4294901760, %v48_v6  ;;  %v47_v10 = vld [vmem:[#allocation2 + $0x18] sm:$0xff]  ;;  %v46_v11 = vld [vmem:[#allocation2 + $0x10] sm:$0xff]  ;;  %v45_v12 = vld [vmem:[#allocation2 + $0x8] sm:$0xff] }
   0x9   :  { %v109_v13 = vsub.f32 %v51_v2, %v463_v3  ;;  %217 = vmatpush.msra.mxu3 %v463_v3  ;;  %v473_v14 = vand.u32 4294901760, %v47_v10  ;;  %68 = vmatpush.msra.mxu0 %v463_v3  ;;  %v476_v15 = vand.u32 4294901760, %v46_v11  ;;  %v478_v16 = vand.u32 4294901760, %v45_v12  ;;  %v29_v23 = vld [vmem:[%s539_s0 + $0x8] sm:$0xff]  ;;  %v44_v45 = vld [vmem:[#allocation2] sm:$0xff]  ;;  %s438_s0 = smov [#allocation5]  }
   0xa   :  { %v115_v17 = vsub.f32 %v50_v4, %v465_v7  ;;  %v121_v18 = vsub.f32 %v49_v5, %v467_v8  ;;  %v127_v19 = vsub.f32 %v48_v6, %v469_v9  ;;  %v81_v46 = vand.u32 4294901760, %v44_v45  ;;  %s335_s19 = sshll.u32 %s438_s0, 4  ;;  %s336_s19 = int_to_ptr.vmem [resolvable:$true] %s335_s19 }
   0xb   :  { %v110_v20 = vand.u32 4294901760, %v109_v13  ;;  %175 = vmatpush.msra.mxu2 %v109_v13  ;;  %219 = vmatpush.msra.mxu3 %v465_v7  ;;  %v133_v21 = vsub.f32 %v47_v10, %v473_v14  ;;  %v139_v22 = vsub.f32 %v46_v11, %v476_v15  ;;  %v145_v29 = vsub.f32 %v45_v12, %v478_v16 }
   0xc   :  { %v116_v24 = vand.u32 4294901760, %v115_v17  ;;  %v122_v25 = vand.u32 4294901760, %v121_v18  ;;  %v489_v26 = vand.u32 4294901760, %v127_v19  ;;  %70 = vmatpush.msra.mxu0 %v465_v7  ;;  %v151_v47 = vsub.f32 %v44_v45, %v81_v46 }
   0xd   :  { %v111_v27 = vsub.f32 %v109_v13, %v110_v20  ;;  %178 = vmatpush.msra.mxu2 %v115_v17  ;;  %v492_v28 = vand.u32 4294901760, %v133_v21  ;;  %221 = vmatpush.msra.mxu3 %v467_v8  ;;  %v140_v34 = vand.u32 4294901760, %v139_v22  ;;  %v146_v38 = vand.u32 4294901760, %v145_v29 }
   0xe   :  { %v117_v30 = vsub.f32 %v115_v17, %v116_v24  ;;  %v123_v31 = vsub.f32 %v121_v18, %v122_v25  ;;  %72 = vmatpush.msra.mxu0 %v467_v8  ;;  %v129_v33 = vsub.f32 %v127_v19, %v489_v26  ;;  %v152_v48 = vand.u32 4294901760, %v151_v47 }
   0xf   :  { %v112_v32 = vand.u32 4294901760, %v111_v27  ;;  %181 = vmatpush.msra.mxu2 %v121_v18  ;;  %223 = vmatpush.msra.mxu3 %v469_v9  ;;  %v135_v37 = vsub.f32 %v133_v21, %v492_v28  ;;  %v141_v40 = vsub.f32 %v139_v22, %v140_v34  ;;  %v147_v42 = vsub.f32 %v145_v29, %v146_v38 }
  0x10   :  { %36 = vperm.xlu0 %380, %v29_v23   ;;  %v118_v35 = vand.u32 4294901760, %v117_v30  ;;  %74 = vmatpush.msra.mxu0 %v469_v9  ;;  %v124_v36 = vand.u32 4294901760, %v123_v31  ;;  %v130_v39 = vand.u32 4294901760, %v129_v33  ;;  %v153_v49 = vsub.f32 %v151_v47, %v152_v48 }
  0x11   :  { %113 = vmatpush.msra.mxu1 %v112_v32  ;;  %184 = vmatpush.msra.mxu2 %v127_v19  ;;  %v136_v41 = vand.u32 4294901760, %v135_v37  ;;  %v142_v43 = vand.u32 4294901760, %v141_v40  ;;  %v148_v44 = vand.u32 4294901760, %v147_v42  ;;  %v31_v52 = vand.u32 127, %v30_v51 }
  0x12   :  { %225 = vmatpush.msra.mxu3 %v473_v14  ;;  %76 = vmatpush.msra.mxu0 %v473_v14  ;;  %v154_v50 = vand.u32 4294901760, %v153_v49 }
  0x13   :  { %119 = vmatpush.msra.mxu1 %v118_v35  ;;  %187 = vmatpush.msra.mxu2 %v133_v21 }
  0x14   :  { %227 = vmatpush.msra.mxu3 %v476_v15  ;;  %78 = vmatpush.msra.mxu0 %v476_v15 }
  0x15   :  { %125 = vmatpush.msra.mxu1 %v124_v36  ;;  %190 = vmatpush.msra.mxu2 %v139_v22 }
  0x16   :  { %229 = vmatpush.msra.mxu3 %v478_v16  ;;  %80 = vmatpush.msra.mxu0 %v478_v16 }
  0x17   :  { %131 = vmatpush.msra.mxu1 %v130_v39  ;;  %193 = vmatpush.msra.mxu2 %v145_v29 }
  0x18   :  { %231 = vmatpush.msra.mxu3 %v81_v46  ;;  %82 = vmatpush.msra.mxu0 %v81_v46 }
  0x19   :  { %137 = vmatpush.msra.mxu1 %v136_v41  ;;  %196 = vmatpush.msra.mxu2 %v151_v47 }
  0x1a   :  { %366 = vmatpush.msrb.mxu3 %v463_v3  ;;  %256 = vmatpush.msrb.mxu0 %v110_v20 }
  0x1b   :  { %143 = vmatpush.msra.mxu1 %v142_v43  ;;  %358 = vmatpush.msrb.mxu2 %v110_v20 }
  0x1c   :  { %367 = vmatpush.msrb.mxu3 %v465_v7  ;;  %260 = vmatpush.msrb.mxu0 %v116_v24 }
  0x1d   :  { %149 = vmatpush.msra.mxu1 %v148_v44  ;;  %359 = vmatpush.msrb.mxu2 %v116_v24 }
  0x1e   :  { %368 = vmatpush.msrb.mxu3 %v467_v8  ;;  %264 = vmatpush.msrb.mxu0 %v122_v25 }
  0x1f   :  { %360 = vmatpush.msrb.mxu2 %v122_v25  ;;  %155 = vmatpush.msra.mxu1 %v154_v50 }
  0x20   :  { %369 = vmatpush.msrb.mxu3 %v469_v9  ;;  %268 = vmatpush.msrb.mxu0 %v489_v26 }
  0x21   :  { %303 = vmatpush.msrb.mxu1 %v463_v3  ;;  %361 = vmatpush.msrb.mxu2 %v489_v26 }
  0x22   :  { %370 = vmatpush.msrb.mxu3 %v473_v14  ;;  %272 = vmatpush.msrb.mxu0 %v492_v28 }
  0x23   :  { %305 = vmatpush.msrb.mxu1 %v465_v7  ;;  %362 = vmatpush.msrb.mxu2 %v492_v28 }
  0x24   :  { %371 = vmatpush.msrb.mxu3 %v476_v15  ;;  %276 = vmatpush.msrb.mxu0 %v140_v34 }
  0x25   :  { %307 = vmatpush.msrb.mxu1 %v467_v8  ;;  %363 = vmatpush.msrb.mxu2 %v140_v34 }
  0x26   :  { %372 = vmatpush.msrb.mxu3 %v478_v16  ;;  %280 = vmatpush.msrb.mxu0 %v146_v38 }
  0x27   :  { %309 = vmatpush.msrb.mxu1 %v469_v9  ;;  %364 = vmatpush.msrb.mxu2 %v146_v38 }
  0x28   :  { %373 = vmatpush.msrb.mxu3 %v81_v46  ;;  %284 = vmatpush.msrb.mxu0 %v152_v48 }
  0x29   :  { %311 = vmatpush.msrb.mxu1 %v473_v14  ;;  %365 = vmatpush.msrb.mxu2 %v152_v48 }
  0x2b   :  { %313 = vmatpush.msrb.mxu1 %v476_v15 }
  0x2d   :  { %315 = vmatpush.msrb.mxu1 %v478_v16 }
  0x2f   :  { %317 = vmatpush.msrb.mxu1 %v81_v46 }
  0x7a   :  { %v34_v53 = vpop.permute.xlu0 %33 }
  0x7b   :  { %vm38_vm1 = vcmp.eq.s32.totalorder %v34_v53, %v31_v52 }
  0x7c   :  { %v350_v55 = vsel %vm38_vm1, 1.0, %v437_v54 }
  0x7d   :  { %352 = vmatmul.msk.f32.vlgmr.msra.gmra.mxu1 %vm52_vm0, %v350_v55  ;;  %v54_v56 = vsel %vm52_vm0, %v350_v55, 0 }
  0x7e   :  { %v84_v57 = vsub.f32 %v54_v56, %v54_v56 }
  0x80   :  { %199 = vmatmul.f32.vlgmr.msra.gmra.mxu2 %v84_v57  ;;  %v85_v58 = vand.u32 4294901760, %v84_v57 }
  0x82   :  { %235 = vmatmul.f32.vlgmr.msra.gmra.mxu3 %v85_v58  ;;  %v37_v59 = vpop.permute.xlu0 %36  ;;  %v86_v60 = vsub.f32 %v84_v57, %v85_v58 }
  0x83   :  { %vm39_vm2 = vcmp.eq.s32.totalorder %v37_v59, %v31_v52 }
  0x84   :  { %v351_v61 = vsel %vm39_vm2, 1.0, %v437_v54  ;;  %v87_v62 = vand.u32 4294901760, %v86_v60 }
  0x85   :  { %353 = vmatmul.msk.f32.gmra.mxu1 %vm52_vm0, %v351_v61  ;;  %v57_v63 = vsel %vm52_vm0, %v351_v61, 0 }
  0x86   :  { %88 = vmatmul.f32.vlgmr.msra.gmra.mxu0 %v87_v62  ;;  %v92_v0 = vsub.f32 %v57_v63, %v57_v63 }
  0x88   :  { %204 = vmatmul.f32.gmra.mxu2 %v92_v0  ;;  %v93_v1 = vand.u32 4294901760, %v92_v0 }
  0x8a   :  { %241 = vmatmul.f32.gmra.mxu3 %v93_v1  ;;  %v94_v2 = vsub.f32 %v92_v0, %v93_v1 }
  0x8c   :  { %v95_v3 = vand.u32 4294901760, %v94_v2 }
  0x8d   :  { %356 = vmatmul.msk.f32.vlgmr.msrb.gmra.mxu1 %vm52_vm0, %v350_v55 }
  0x8e   :  { %96 = vmatmul.f32.gmra.mxu0 %v95_v3 }
  0x90   :  { %355 = vmatmul.msk.f32.vlgmr.msrb.gmra.mxu2 %vm52_vm0, %v351_v61 }
  0x92   :  { %357 = vmatmul.msk.f32.vlgmr.msrb.gmra.mxu3 %vm52_vm0, %v351_v61 }
  0x96   :  { %354 = vmatmul.msk.f32.vlgmr.msrb.gmra.mxu0 %vm52_vm0, %v350_v55 }
  0xfa   :  { %v158_v4 = vpop.f32.mrf.mxu1 }
 0x102   :  { %v162_v8 = vpop.f32.mrf.mxu1 }
 0x103   :  { %v89_v5 = vpop.f32.mrf.mxu0  ;;  %v200_v6 = vpop.f32.mrf.mxu2 }
 0x104   :  { %v159_v9 = vadd.f32 %v158_v4, %v89_v5 }
 0x105   :  { %v236_v7 = vpop.f32.mrf.mxu3 }
 0x106   :  { %v201_v14 = vadd.f32 %v200_v6, %v159_v9 }
 0x108   :  { %v237_v16 = vadd.f32 %v236_v7, %v201_v14 }
 0x10a   :  { %v320_v22 = vpop.f32.mrf.mxu1 }
 0x10b   :  { %v97_v10 = vpop.f32.mrf.mxu0  ;;  %v205_v11 = vpop.f32.mrf.mxu2 }
 0x10c   :  { %v163_v12 = vadd.f32 %v162_v8, %v97_v10 }
 0x10d   :  { %v242_v13 = vpop.f32.mrf.mxu3 }
 0x10e   :  { %v206_v15 = vadd.f32 %v205_v11, %v163_v12 }
 0x110   :  { %v243_v17 = vadd.f32 %v242_v13, %v206_v15 }
 0x113   :  { %v287_v18 = vpop.f32.mrf.mxu0  ;;  %v291_v19 = vpop.f32.mrf.mxu2 }
 0x114   :  { %v288_v20 = vadd.f32 %v287_v18, %v237_v16  ;;  %v292_v21 = vadd.f32 %v291_v19, %v243_v17 }
 0x115   :  { %v324_v23 = vpop.f32.mrf.mxu3 }
 0x116   :  { %v321_v24 = vadd.f32 %v320_v22, %v288_v20  ;;  %v325_v25 = vadd.f32 %v324_v23, %v292_v21 }
 0x118   :  { %v327_v26 = vmul.f32 10.0, %v321_v24  ;;  %v328_v27 = vmul.f32 10.0, %v325_v25 }
 0x11a   :  { %329 = vst [vmem:[#allocation5] sm:$0xff] %v327_v26 }
 0x11b   :  { %330 = vst [vmem:[#allocation5 + $0x8] sm:$0xff] %v328_v27 }
 0x11c   :  { %343 = dma.vmem_to_hbm [thread:$0]  %s336_s19, 256, %s338_s22, [#allocation4], %s434_s14, %s434_s14, %s435_s15  }
 0x11d   :  { %431 = dma.done.wait [#allocation4], 256  }
 0x11e   :  { %432 = vsyncadd [#allocation4], 4294967040 }
 0x11f   :  { %348 = vsyncpa [#allocation3], 1 }
 0x120   :  { %349 = vsyncpa [#allocation4], 1 }

// kernel: tpu_custom_call.1
= control target key start
LH: loop header
LB: loop body
LE: loop exit
PB: predicated region body
PF: predicated region fallthrough
CT: control target
= control target key end

     0   :  { %7 = vsyncpa [#allocation3], 0  ;;  %s215_s0 = inlined_call_operand.vmem [shape: s32[16,1], index: 0, kind: input, shape index: {}]   ;;  %s216_s1 = inlined_call_operand.hbm [shape: f32[64,128], index: 1, kind: input, shape index: {}]   ;;  %s217_s2 = inlined_call_operand.hbm [shape: f32[16,128], index: 2, kind: output, shape index: {}]  }
   0x1   :  { %8 = vsyncpa [#allocation4], 0  ;;  %s15_s11 = sshll.u32 %s216_s1, 4  ;;  %s176_s12 = smov [#allocation2]   ;;  %s16_s11 = int_to_ptr.hbm [resolvable:$true] %s15_s11 }
   0x2   :  { %s17_s13 = sshll.u32 %s176_s12, 4  ;;  %s177_s14 = smov 128   ;;  %s18_s13 = int_to_ptr.vmem [resolvable:$true] %s17_s13 }
   0x3   :  { %s178_s15 = smov 8  }
   0x4   :  { %23 = dma.hbm_to_vmem [thread:$0]  %s16_s11, 1024, %s18_s13, [#allocation3], %s177_s14, %s177_s14, %s178_s15  }
   0x5   :  { %172 = dma.done.wait [#allocation3], 1024  }
   0x6   :  { %173 = vsyncadd [#allocation3], 4294966272  ;;  %v179_v0 = vmov 0   ;;  %v28_v1 = vld [vmem:[%s215_s0] sm:$0xff]  ;;  %v51_v2 = vld [vmem:[#allocation2 + $0x38] sm:$0xff]  ;;  %v30_v11 = vlaneseq  ;;  %vm52_vm0 = vcmask 523264  }
   0x7   :  { %123 = vset.pattern.permute.xlu0 %v179_v0  ;;  %67 = vmatpush.msra.mxu0 %v51_v2  ;;  %v50_v3 = vld [vmem:[#allocation2 + $0x30] sm:$0xff]  ;;  %v49_v4 = vld [vmem:[#allocation2 + $0x28] sm:$0xff]  ;;  %v48_v5 = vld [vmem:[#allocation2 + $0x20] sm:$0xff]  ;;  %v180_v14 = vmov 0.0   ;;  %s92_s22 = sshll.u32 %s217_s2, 4  ;;  %s93_s22 = int_to_ptr.hbm [resolvable:$true] %s92_s22 }
   0x8   :  { %33 = vperm.xlu0 %123, %v28_v1   ;;  %109 = vmatpush.msra.mxu1 %v51_v2  ;;  %v29_v6 = vld [vmem:[%s215_s0 + $0x8] sm:$0xff]  ;;  %v47_v7 = vld [vmem:[#allocation2 + $0x18] sm:$0xff]  ;;  %v46_v8 = vld [vmem:[#allocation2 + $0x10] sm:$0xff]  ;;  %v31_v12 = vand.u32 127, %v30_v11  ;;  %s181_s0 = smov [#allocation5]  }
   0x9   :  { %68 = vmatpush.msra.mxu0 %v50_v3  ;;  %v45_v9 = vld [vmem:[#allocation2 + $0x8] sm:$0xff]  ;;  %v44_v10 = vld [vmem:[#allocation2] sm:$0xff]  ;;  %s90_s19 = sshll.u32 %s181_s0, 4  ;;  %s91_s19 = int_to_ptr.vmem [resolvable:$true] %s90_s19 }
   0xa   :  { %110 = vmatpush.msra.mxu1 %v50_v3 }
   0xb   :  { %69 = vmatpush.msra.mxu0 %v49_v4 }
   0xc   :  { %111 = vmatpush.msra.mxu1 %v49_v4 }
   0xd   :  { %70 = vmatpush.msra.mxu0 %v48_v5 }
   0xe   :  { %112 = vmatpush.msra.mxu1 %v48_v5 }
   0xf   :  { %71 = vmatpush.msra.mxu0 %v47_v7 }
  0x10   :  { %36 = vperm.xlu0 %123, %v29_v6   ;;  %113 = vmatpush.msra.mxu1 %v47_v7 }
  0x11   :  { %72 = vmatpush.msra.mxu0 %v46_v8 }
  0x12   :  { %114 = vmatpush.msra.mxu1 %v46_v8 }
  0x13   :  { %73 = vmatpush.msra.mxu0 %v45_v9 }
  0x14   :  { %115 = vmatpush.msra.mxu1 %v45_v9 }
  0x15   :  { %74 = vmatpush.msra.mxu0 %v44_v10 }
  0x16   :  { %116 = vmatpush.msra.mxu1 %v44_v10 }
  0x7a   :  { %v34_v13 = vpop.permute.xlu0 %33 }
  0x7b   :  { %vm38_vm1 = vcmp.eq.s32.totalorder %v34_v13, %v31_v12 }
  0x7c   :  { %v105_v15 = vsel %vm38_vm1, 1.0, %v180_v14 }
  0x7d   :  { %107 = vmatmul.msk.f32.vlgmr.msra.gmra.mxu0 %vm52_vm0, %v105_v15 }
  0x82   :  { %v37_v16 = vpop.permute.xlu0 %36 }
  0x83   :  { %vm39_vm2 = vcmp.eq.s32.totalorder %v37_v16, %v31_v12 }
  0x84   :  { %v106_v17 = vsel %vm39_vm2, 1.0, %v180_v14 }
  0x85   :  { %108 = vmatmul.msk.f32.vlgmr.msra.gmra.mxu1 %vm52_vm0, %v106_v17 }
  0xfa   :  { %v76_v18 = vpop.f32.mrf.mxu0 }
  0xfb   :  { %v82_v19 = vmul.f32 10.0, %v76_v18 }
  0xfd   :  { %84 = vst [vmem:[#allocation5] sm:$0xff] %v82_v19 }
 0x102   :  { %v79_v20 = vpop.f32.mrf.mxu1 }
 0x103   :  { %v83_v21 = vmul.f32 10.0, %v79_v20 }
 0x105   :  { %85 = vst [vmem:[#allocation5 + $0x8] sm:$0xff] %v83_v21 }
 0x106   :  { %98 = dma.vmem_to_hbm [thread:$0]  %s91_s19, 256, %s93_s22, [#allocation4], %s177_s14, %s177_s14, %s178_s15  }
 0x107   :  { %174 = dma.done.wait [#allocation4], 256  }
 0x108   :  { %175 = vsyncadd [#allocation4], 4294967040 }
 0x109   :  { %103 = vsyncpa [#allocation3], 1 }
 0x10a   :  { %104 = vsyncpa [#allocation4], 1 }

</bundles_post_ra>
